<compile_context>
chip_gen: v7x
topology: tpu7x:2x2x1
jax: 0.10.0
libtpu: 0.0.40
codegen_flags: <defaults>
</compile_context>

<pallas_src>
import functools

import jax
import jax.numpy as jnp
from jax.experimental import pallas as pl
from jax.experimental.pallas import tpu as pltpu


# Rows per batch tile. For these tiny feature dims (S=16, H=32, f32) a tile is
# TM*(S + 2H + 1)*4 B ~= 324 KiB at TM=1024, comfortably inside the scoped
# VMEM budget of every generation (v5e 16 MiB, v6e 32 MiB, v7x 32 MiB) even
# with double buffering.
_TILE_ROWS = 1024


def _round_up(x, m):
    return (x + m - 1) // m * m


# -----------------------------------------------------------------------------
# Pallas kernel: one batch tile of the 3-layer MLP.
# -----------------------------------------------------------------------------
def _critic_kernel(x_ref, w1_ref, b1_ref, w2_ref, b2_ref, w3_ref, b3_ref,
                   o_ref, *, use_tanh):
    act = jnp.tanh if use_tanh else jax.nn.relu

    x = x_ref[...]                                                    # (TM, S)
    h1 = act(jnp.dot(x, w1_ref[...],
                     preferred_element_type=jnp.float32) + b1_ref[...])  # (TM, H)
    h2 = act(jnp.dot(h1, w2_ref[...],
                     preferred_element_type=jnp.float32) + b2_ref[...])  # (TM, H)
    # Final layer has a single output unit: use VPU mul + XLU lane reduction
    # instead of a 1-wide MXU matmul (which would waste 127+/128 MXU columns).
    v = jnp.sum(h2 * w3_ref[...], axis=-1, keepdims=True) + b3_ref[...]  # (TM, 1)
    o_ref[...] = v.astype(o_ref.dtype)


def critic_forward(s, params, *, use_tanh=True, tile_rows=_TILE_ROWS):
    """Forward pass matching Critic.forward semantics.

    Accepts s of rank 1, 2, or 3 (..., state_dim) and returns values shaped
    exactly like the torch module: rank-1 -> (1,), rank-2 -> (B, 1),
    rank-3 -> (L, B, 1).
    """
    w1, b1, w2, b2, w3_row, b3 = params
    orig_shape = s.shape
    state_dim = orig_shape[-1]
    hidden = w1.shape[1]

    # Flatten all leading dims -> (N, state_dim).
    s2d = s.reshape(-1, state_dim).astype(jnp.float32)
    n = s2d.shape[0]

    # Pick a sublane-aligned tile and pad N up to a multiple of it (zero rows
    # compute garbage values that are sliced off below).
    tm = min(tile_rows, _round_up(n, 8))
    n_pad = _round_up(n, tm)
    if n_pad != n:
        s2d = jnp.pad(s2d, ((0, n_pad - n), (0, 0)))
    num_tiles = n_pad // tm

    kernel = functools.partial(_critic_kernel, use_tanh=use_tanh)

    weight_spec = lambda shape: pl.BlockSpec(shape, lambda i: (0, 0))

    flops = 2 * n_pad * (state_dim * hidden + hidden * hidden + hidden)
    transcendentals = (2 * n_pad * hidden) if use_tanh else 0
    bytes_accessed = (
        n_pad * state_dim * 4                       # input stream
        + (state_dim * hidden + hidden * hidden + 3 * hidden + 1) * 4  # params
        + n_pad * 4                                 # output
    )

    out = pl.pallas_call(
        kernel,
        out_shape=jax.ShapeDtypeStruct((n_pad, 1), jnp.float32),
        grid=(num_tiles,),
        in_specs=[
            pl.BlockSpec((tm, state_dim), lambda i: (i, 0)),   # streamed rows
            weight_spec((state_dim, hidden)),                   # w1 (resident)
            weight_spec((1, hidden)),                           # b1
            weight_spec((hidden, hidden)),                      # w2
            weight_spec((1, hidden)),                           # b2
            weight_spec((1, hidden)),                           # w3 as a row
            weight_spec((1, 1)),                                # b3
        ],
        out_specs=pl.BlockSpec((tm, 1), lambda i: (i, 0)),
        compiler_params=pltpu.CompilerParams(
            dimension_semantics=("parallel",)),
        cost_estimate=pl.CostEstimate(
            flops=flops,
            transcendentals=transcendentals,
            bytes_accessed=bytes_accessed),
    )(s2d, w1, b1, w2, b2, w3_row, b3)

    out = out[:n]
    # Restore leading dims + trailing 1 (== torch's squeeze behavior:
    # rank-1 -> (1,), rank-2 -> (B,1), rank-3 -> (L,B,1)).
    return out.reshape(orig_shape[:-1] + (1,))


# -----------------------------------------------------------------------------
# Deterministic parameter init (orthogonal weights, zero bias), as in
# orthogonal_init(layer, gain=1.0). Weights stored as (in, out); fc3 weight is
# stored as a (1, hidden) row for the VPU-reduce final layer.
# -----------------------------------------------------------------------------
def init_critic_params(key, state_dim, hidden_width, dtype=jnp.float32):
    k1, k2, k3 = jax.random.split(key, 3)
    orth = jax.nn.initializers.orthogonal(scale=1.0)
    # torch weight is (out, in); we store (in, out) => init (out, in) then T.
    w1 = orth(k1, (hidden_width, state_dim), dtype).T
    w2 = orth(k2, (hidden_width, hidden_width), dtype).T
    w3_row = orth(k3, (1, hidden_width), dtype)          # keep as (1, H) row
    b1 = jnp.zeros((1, hidden_width), dtype)
    b2 = jnp.zeros((1, hidden_width), dtype)
    b3 = jnp.zeros((1, 1), dtype)
    return (w1, b1, w2, b2, w3_row, b3)


# -----------------------------------------------------------------------------
# Pure-JAX reference for sanity checks.
# -----------------------------------------------------------------------------
def critic_ref(s, params, *, use_tanh=True):
    w1, b1, w2, b2, w3_row, b3 = params
    act = jnp.tanh if use_tanh else jax.nn.relu
    h1 = act(s @ w1 + b1[0])
    h2 = act(h1 @ w2 + b2[0])
    return h2 @ w3_row.T + b3[0]


if __name__ == "__main__":
    state_dim = 16
    hidden_width = 32
    batch = 8

    key = jax.random.PRNGKey(0)
    pkey, xkey, xkey3 = jax.random.split(key, 3)
    params = init_critic_params(pkey, state_dim, hidden_width)

    # --- rank-2 input (batch, state_dim): the common PPO rollout case. ---
    s = jax.random.normal(xkey, (batch, state_dim), dtype=jnp.float32)
    v = jax.block_until_ready(critic_forward(s, params, use_tanh=True))
    v_ref = critic_ref(s, params, use_tanh=True)
    assert v.shape == (batch, 1), v.shape
    assert jnp.allclose(v, v_ref, atol=1e-5, rtol=1e-5), \
        f"rank-2 max err {jnp.max(jnp.abs(v - v_ref))}"

    # --- rank-1 input (state_dim,): torch returns shape (1,). ---
    s1 = s[0]
    v1 = jax.block_until_ready(critic_forward(s1, params, use_tanh=True))
    assert v1.shape == (1,), v1.shape
    assert jnp.allclose(v1, v_ref[0], atol=1e-5, rtol=1e-5)

    # --- rank-3 input (L, B, state_dim): torch returns (L, B, 1). ---
    s3 = jax.random.normal(xkey3, (2, batch, state_dim), dtype=jnp.float32)
    v3 = jax.block_until_ready(critic_forward(s3, params, use_tanh=True))
    v3_ref = critic_ref(s3.reshape(-1, state_dim), params,
                        use_tanh=True).reshape(2, batch, 1)
    assert v3.shape == (2, batch, 1), v3.shape
    assert jnp.allclose(v3, v3_ref, atol=1e-5, rtol=1e-5)

    # --- larger, non-tile-multiple batch to exercise padding + multi-tile grid. ---
    big_n = 2600  # not a multiple of the tile; forces pad + slice path
    sb = jax.random.normal(xkey, (big_n, state_dim), dtype=jnp.float32)
    vb = jax.block_until_ready(
        critic_forward(sb, params, use_tanh=True, tile_rows=512))
    vb_ref = critic_ref(sb, params, use_tanh=True)
    assert vb.shape == (big_n, 1), vb.shape
    assert jnp.allclose(vb, vb_ref, atol=1e-5, rtol=1e-5), \
        f"big-batch max err {jnp.max(jnp.abs(vb - vb_ref))}"

    print("KERNEL_OK")
</pallas_src>

<mosaic_0001>
module attributes {stable_mosaic.version = 11 : i64} {
  func.func @_critic_kernel(%arg0: i32, %arg1: memref<8x16xf32, #tpu.memory_space<vmem>>, %arg2: memref<16x32xf32, #tpu.memory_space<vmem>>, %arg3: memref<1x32xf32, #tpu.memory_space<vmem>>, %arg4: memref<32x32xf32, #tpu.memory_space<vmem>>, %arg5: memref<1x32xf32, #tpu.memory_space<vmem>>, %arg6: memref<1x32xf32, #tpu.memory_space<vmem>>, %arg7: memref<1x1xf32, #tpu.memory_space<vmem>>, %arg8: memref<8x1xf32, #tpu.memory_space<vmem>>) attributes {dimension_semantics = [#tpu.dimension_semantics<parallel>], iteration_bounds = array<i64: 1>, scalar_prefetch = 0 : i64, scratch_operands = 0 : i64, tpu.core_type = #tpu.core_type<tc>, window_params = [{transform_indices = @transform_0, window_bounds = array<i64: 8, 16>}, {pipeline_mode = #tpu.pipeline_mode<synchronous>, transform_indices = @transform_1, window_bounds = array<i64: 16, 32>}, {pipeline_mode = #tpu.pipeline_mode<synchronous>, transform_indices = @transform_2, window_bounds = array<i64: 1, 32>}, {pipeline_mode = #tpu.pipeline_mode<synchronous>, transform_indices = @transform_3, window_bounds = array<i64: 32, 32>}, {pipeline_mode = #tpu.pipeline_mode<synchronous>, transform_indices = @transform_4, window_bounds = array<i64: 1, 32>}, {pipeline_mode = #tpu.pipeline_mode<synchronous>, transform_indices = @transform_5, window_bounds = array<i64: 1, 32>}, {pipeline_mode = #tpu.pipeline_mode<synchronous>, transform_indices = @transform_6, window_bounds = array<i64: 1, 1>}, {transform_indices = @transform_7, window_bounds = array<i64: 8, 1>}]} {
    %c0 = arith.constant 0 : index
    %c0_0 = arith.constant 0 : index
    %0 = vector.load %arg1[%c0, %c0_0] : memref<8x16xf32, #tpu.memory_space<vmem>>, vector<8x16xf32>
    %c0_1 = arith.constant 0 : index
    %c0_2 = arith.constant 0 : index
    %1 = vector.load %arg2[%c0_1, %c0_2] : memref<16x32xf32, #tpu.memory_space<vmem>>, vector<16x32xf32>
    %cst = arith.constant dense<0.000000e+00> : vector<8x32xf32>
    %2 = tpu.matmul %0, %1, %cst {dimension_numbers = #tpu.dot_dimension_numbers<[1], [0], [0], [1], [0, 0, 1, 1], [], []>} : vector<8x16xf32>, vector<16x32xf32>, vector<8x32xf32> -> vector<8x32xf32>
    %c0_3 = arith.constant 0 : index
    %c0_4 = arith.constant 0 : index
    %3 = vector.load %arg3[%c0_3, %c0_4] : memref<1x32xf32, #tpu.memory_space<vmem>>, vector<1x32xf32>
    %4 = vector.broadcast %3 : vector<1x32xf32> to vector<8x32xf32>
    %5 = arith.addf %2, %4 : vector<8x32xf32>
    %6 = math.tanh %5 : vector<8x32xf32>
    %c0_5 = arith.constant 0 : index
    %c0_6 = arith.constant 0 : index
    %7 = vector.load %arg4[%c0_5, %c0_6] : memref<32x32xf32, #tpu.memory_space<vmem>>, vector<32x32xf32>
    %cst_7 = arith.constant dense<0.000000e+00> : vector<8x32xf32>
    %8 = tpu.matmul %6, %7, %cst_7 {dimension_numbers = #tpu.dot_dimension_numbers<[1], [0], [0], [1], [0, 0, 1, 1], [], []>} : vector<8x32xf32>, vector<32x32xf32>, vector<8x32xf32> -> vector<8x32xf32>
    %c0_8 = arith.constant 0 : index
    %c0_9 = arith.constant 0 : index
    %9 = vector.load %arg5[%c0_8, %c0_9] : memref<1x32xf32, #tpu.memory_space<vmem>>, vector<1x32xf32>
    %10 = vector.broadcast %9 : vector<1x32xf32> to vector<8x32xf32>
    %11 = arith.addf %8, %10 : vector<8x32xf32>
    %12 = math.tanh %11 : vector<8x32xf32>
    %c0_10 = arith.constant 0 : index
    %c0_11 = arith.constant 0 : index
    %13 = vector.load %arg6[%c0_10, %c0_11] : memref<1x32xf32, #tpu.memory_space<vmem>>, vector<1x32xf32>
    %14 = vector.broadcast %13 : vector<1x32xf32> to vector<8x32xf32>
    %15 = arith.mulf %12, %14 : vector<8x32xf32>
    %cst_12 = arith.constant dense<0.000000e+00> : vector<8xf32>
    %16 = vector.multi_reduction <add>, %15, %cst_12 [1] : vector<8x32xf32> to vector<8xf32>
    %17 = vector.shape_cast %16 : vector<8xf32> to vector<8x1xf32>
    %c0_13 = arith.constant 0 : index
    %c0_14 = arith.constant 0 : index
    %18 = vector.load %arg7[%c0_13, %c0_14] : memref<1x1xf32, #tpu.memory_space<vmem>>, vector<1x1xf32>
    %19 = vector.broadcast %18 : vector<1x1xf32> to vector<8x1xf32>
    %20 = arith.addf %17, %19 : vector<8x1xf32>
    %c0_15 = arith.constant 0 : index
    %c0_16 = arith.constant 0 : index
    %21 = vector.load %arg8[%c0_15, %c0_16] : memref<8x1xf32, #tpu.memory_space<vmem>>, vector<8x1xf32>
    tpu.vector_store %arg8[%c0_15, %c0_16], %20 {strides = array<i32>} : memref<8x1xf32, #tpu.memory_space<vmem>>, vector<8x1xf32>,
    return
  }
  func.func @transform_0(%arg0: i32) -> (i32, i32) {
    %c0_i32 = arith.constant 0 : i32
    %c0_i32_0 = arith.constant 0 : i32
    return %arg0, %c0_i32 : i32, i32
  }
  func.func @transform_1(%arg0: i32) -> (i32, i32) {
    %c0_i32 = arith.constant 0 : i32
    %c0_i32_0 = arith.constant 0 : i32
    %c0_i32_1 = arith.constant 0 : i32
    return %c0_i32, %c0_i32_0 : i32, i32
  }
  func.func @transform_2(%arg0: i32) -> (i32, i32) {
    %c0_i32 = arith.constant 0 : i32
    %c0_i32_0 = arith.constant 0 : i32
    %c0_i32_1 = arith.constant 0 : i32
    return %c0_i32, %c0_i32_0 : i32, i32
  }
  func.func @transform_3(%arg0: i32) -> (i32, i32) {
    %c0_i32 = arith.constant 0 : i32
    %c0_i32_0 = arith.constant 0 : i32
    %c0_i32_1 = arith.constant 0 : i32
    return %c0_i32, %c0_i32_0 : i32, i32
  }
  func.func @transform_4(%arg0: i32) -> (i32, i32) {
    %c0_i32 = arith.constant 0 : i32
    %c0_i32_0 = arith.constant 0 : i32
    %c0_i32_1 = arith.constant 0 : i32
    return %c0_i32, %c0_i32_0 : i32, i32
  }
  func.func @transform_5(%arg0: i32) -> (i32, i32) {
    %c0_i32 = arith.constant 0 : i32
    %c0_i32_0 = arith.constant 0 : i32
    %c0_i32_1 = arith.constant 0 : i32
    return %c0_i32, %c0_i32_0 : i32, i32
  }
  func.func @transform_6(%arg0: i32) -> (i32, i32) {
    %c0_i32 = arith.constant 0 : i32
    %c0_i32_0 = arith.constant 0 : i32
    %c0_i32_1 = arith.constant 0 : i32
    return %c0_i32, %c0_i32_0 : i32, i32
  }
  func.func @transform_7(%arg0: i32) -> (i32, i32) {
    %c0_i32 = arith.constant 0 : i32
    %c0_i32_0 = arith.constant 0 : i32
    return %arg0, %c0_i32 : i32, i32
  }
}

</mosaic_0001>

<bundles_post_ra>
// kernel: tpu_custom_call.1
= control target key start
LH: loop header
LB: loop body
LE: loop exit
PB: predicated region body
PF: predicated region fallthrough
CT: control target
= control target key end

     0   :  { %s493_s0 = inlined_call_operand.hbm [shape: f32[8,16], index: 0, kind: input, shape index: {}]   ;;  %s494_s1 = inlined_call_operand.hbm [shape: f32[16,32], index: 1, kind: input, shape index: {}]   ;;  %s495_s2 = inlined_call_operand.vmem [shape: f32[1,32], index: 2, kind: input, shape index: {}]   ;;  %s496_s3 = inlined_call_operand.hbm [shape: f32[32,32], index: 3, kind: input, shape index: {}]   ;;  %s497_s4 = inlined_call_operand.vmem [shape: f32[1,32], index: 4, kind: input, shape index: {}]   ;;  %s498_s5 = inlined_call_operand.vmem [shape: f32[1,32], index: 5, kind: input, shape index: {}]   ;;  %s499_s6 = inlined_call_operand.<no memory space> [shape: f32[1,1], index: 6, kind: input, shape index: {}]   ;;  %s500_s7 = inlined_call_operand.vmem [shape: f32[8,1], index: 7, kind: output, shape index: {}]  }
   0x1   :  { %v12_v0 = vstv %s499_s6 }
   0x2   :  { %13 = vst [vmem:[#allocation2] sm:$0x1] %v12_v0 }
   0x3   :  { %14 = vsyncpa [#allocation4], 0 }
   0x4   :  { %15 = vsyncpa [#allocation6], 0  ;;  %s388_s26 = smov [#allocation5]   ;;  %s318_s30 = scalar_lea.hbm %s494_s1, 256 }
   0x5   :  { %s31_s27 = sshll.u32 %s388_s26, 4  ;;  %p319_p0 = scmp.ne.s32.totalorder %s494_s1, %s318_s30  ;;  %s32_s27 = int_to_ptr.vmem [resolvable:$true] %s31_s27 }
   0x6   :  { %p322_p1 = scmp.lt.u32.totalorder %s318_s30, %s494_s1 }
   0x8   :  { %p324_p2 = pnand %p322_p1, %p319_p0 }
   0xa   :  { %327 = shalt.err (!%p324_p2)
}
   0xb   :  { %s328_s6 = scalar_lea.vmem %s32_s27, 256  ;;  %p333_p4 = scmp.lt.s32.totalorder %s32_s27, %s32_s27 }
   0xc   :  { %p329_p3 = scmp.ne.s32.totalorder %s32_s27, %s328_s6  ;;  %p334_p5 = scmp.lt.s32.totalorder %s328_s6, %s328_s6 }
   0xe   :  { %p335_p6 = por %p334_p5, %p333_p4 }
  0x10   :  { %p336_p7 = pnand %p335_p6, %p329_p3 }
  0x12   :  { %339 = shalt.err (!%p336_p7)
}
  0x13   :  { %s389_s12 = smov 128   ;;  %s390_s13 = smov 8  }
  0x14   :  { %37 = dma.hbm_to_vmem [thread:$0]  %s494_s1, 256, %s32_s27, [#allocation6], %s389_s12, %s389_s12, %s390_s13  }
  0x15   :  { %s391_s16 = smov [#allocation3]   ;;  %s392_s18 = smov [#allocation7]  }
  0x16   :  { %s22_s17 = sshll.u32 %s391_s16, 4  ;;  %s45_s19 = sshll.u32 %s392_s18, 4  ;;  %s23_s17 = int_to_ptr.vmem [resolvable:$true] %s22_s17  ;;  %s46_s19 = int_to_ptr.vmem [resolvable:$true] %s45_s19 }
  0x17   :  { %s340_s22 = scalar_lea.hbm %s493_s0, 128 }
  0x18   :  { %p341_p8 = scmp.ne.s32.totalorder %s493_s0, %s340_s22  ;;  %p344_p9 = scmp.lt.u32.totalorder %s340_s22, %s493_s0 }
  0x1a   :  { %p346_p10 = pnand %p344_p9, %p341_p8 }
  0x1c   :  { %349 = shalt.err (!%p346_p10)
}
  0x1d   :  { %s350_s1 = scalar_lea.vmem %s23_s17, 128  ;;  %p355_p12 = scmp.lt.s32.totalorder %s23_s17, %s23_s17 }
  0x1e   :  { %p351_p11 = scmp.ne.s32.totalorder %s23_s17, %s350_s1  ;;  %p356_p13 = scmp.lt.s32.totalorder %s350_s1, %s350_s1 }
  0x20   :  { %p357_p0 = por %p356_p13, %p355_p12 }
  0x22   :  { %p358_p1 = pnand %p357_p0, %p351_p11 }
  0x24   :  { %361 = shalt.err (!%p358_p1)
}
  0x25   :  { %25 = dma.hbm_to_vmem [thread:$0]  %s493_s0, 128, %s23_s17, [#allocation4]  }
  0x26   :  { %s362_s8 = scalar_lea.hbm %s496_s3, 512 }
  0x27   :  { %p363_p2 = scmp.ne.s32.totalorder %s496_s3, %s362_s8  ;;  %p366_p3 = scmp.lt.u32.totalorder %s362_s8, %s496_s3 }
  0x29   :  { %p368_p4 = pnand %p366_p3, %p363_p2 }
  0x2b   :  { %371 = shalt.err (!%p368_p4)
}
  0x2c   :  { %s372_s14 = scalar_lea.vmem %s46_s19, 512  ;;  %p377_p6 = scmp.lt.s32.totalorder %s46_s19, %s46_s19 }
  0x2d   :  { %p373_p5 = scmp.ne.s32.totalorder %s46_s19, %s372_s14  ;;  %p378_p7 = scmp.lt.s32.totalorder %s372_s14, %s372_s14 }
  0x2f   :  { %p379_p8 = por %p378_p7, %p377_p6 }
  0x31   :  { %p380_p9 = pnand %p379_p8, %p373_p5 }
  0x33   :  { %383 = shalt.err (!%p380_p9)
}
  0x34   :  { %51 = dma.hbm_to_vmem [thread:$0]  %s496_s3, 512, %s46_s19, [#allocation6], %s389_s12, %s389_s12, %s390_s13  }
  0x35   :  { %384 = dma.done.wait [#allocation4], 128  }
  0x36   :  { %385 = vsyncadd [#allocation4], 4294967168 }
  0x37   :  { %386 = dma.done.wait [#allocation6], 768  }
  0x38   :  { %387 = vsyncadd [#allocation6], 4294966528  ;;  %v393_v1 = vmov 0.0|0.0   ;;  %vm394_vm0 = vmmov 0   ;;  %v395_v2 = vmov 0.0   ;;  %v68_v3 = vld [vmem:[#allocation5] sm:$0xff] }
  0x39   :  { %297 = vmatprep.subr.bf16.mxu0 %v393_v1  ;;  %283 = vmatprep.mubr.msk.f32.mxu0 %vm394_vm0, %v395_v2  ;;  %v69_v4 = vld [vmem:[#allocation5 + $0x8] sm:$0xff]  ;;  %v67_v6 = vld [vmem:[#allocation3] sm:$0xff]  ;;  %vm77_vm1 = vcmask 130048   ;;  %v152_v7 = vld [vmem:[#allocation7] sm:$0xff]  ;;  %vm163_vm2 = vcmask 261120   ;;  %vm257_vm3 = vcmask 7168  }
  0x3a   :  { %300 = vmatprep.subr.bf16.mxu1 %v393_v1  ;;  %294 = vmatprep.mubr.msk.f32.mxu1 %vm394_vm0, %v395_v2  ;;  %v298_v5 = vpack.c.bf16 %v69_v4, %v68_v3  ;;  %v153_v8 = vld [vmem:[#allocation7 + $0x8] sm:$0xff]  ;;  %v154_v9 = vld [vmem:[#allocation7 + $0x10] sm:$0xff]  ;;  %v155_v11 = vld [vmem:[#allocation7 + $0x18] sm:$0xff] }
  0x3b   :  { %v301_v10 = vpack.c.bf16 %v153_v8, %v152_v7  ;;  %v304_v12 = vpack.c.bf16 %v155_v11, %v154_v9  ;;  %v265_v13 = vld [vmem:[%s495_s2] ss:$0 sm:$0xff] }
  0x3c   :  { %299 = vmatpush3.bf16.msra.mxu0 %v298_v5  ;;  %v267_v18 = vld [vmem:[%s497_s4] ss:$0 sm:$0xff] }
  0x3d   :  { %302 = vmatpush3.bf16.msra.mxu1 %v301_v10  ;;  %v269_v22 = vld [vmem:[%s498_s5] ss:$0 sm:$0xff] }
  0x3e   :  { %303 = vmatprep.subr.bf16.mxu1 %v393_v1  ;;  %v270_v26 = vld [vmem:[#allocation2] ss:$0 sm:$0xff] }
  0x3f   :  { %284 = vmatmul.mubr.msk.f32.vlgmr.msra.gmra.mrb[0].mxu0 %vm77_vm1, %v67_v6 }
  0x41   :  { %305 = vmatpush3.bf16.msra.mxu1 %v304_v12 }
 0x112   :  { %v147_v14 = vpop.f32.mrb[0].mxu0 }
 0x113   :  { %v148_v15 = vadd.f32 %v265_v13, %v147_v14  ;;  %v285_v16 = vpop.f32.mrb[1].mxu0 }
 0x115   :  { %314 = vtanh.f32 %v148_v15 }
 0x11f   :  { %v315_v17 = vpop.eup %314 }
 0x120   :  { %295 = vmatmul.mubr.msk.f32.vlgmr.msra.gmra.mrb[0].mxu1 %vm163_vm2, %v315_v17 }
 0x1f3   :  { %v233_v19 = vpop.f32.mrb[0].mxu1 }
 0x1f4   :  { %v234_v20 = vadd.f32 %v267_v18, %v233_v19  ;;  %v296_v21 = vpop.f32.mrb[1].mxu1 }
 0x1f6   :  { %316 = vtanh.f32 %v234_v20 }
 0x200   :  { %v317_v23 = vpop.eup %316 }
 0x201   :  { %v245_v24 = vmul.f32 %v317_v23, %v269_v22 }
 0x203   :  { %v246_v25 = vsel %vm163_vm2, %v245_v24, 0.0 }
 0x204   :  { %247 = vadd.xlane.f32.xlu0 %v246_v25 }
 0x291   :  { %v248_v27 = vpop.xlane.xlu0 %247 }
 0x292   :  { %v256_v28 = vadd.f32 %v270_v26, %v248_v27 }
 0x294   :  { %258 = vst.msk [vmem:[%s500_s7] sm:$0xff] %vm257_vm3, %v256_v28 }
 0x295   :  { %263 = vsyncpa [#allocation4], 1 }
 0x296   :  { %264 = vsyncpa [#allocation6], 1 }

</bundles_post_ra>
